<compile_context>
chip_gen: v7x
topology: tpu7x:2x2x1
jax: 0.10.0
libtpu: 0.0.40
codegen_flags: <defaults>
</compile_context>

<pallas_src>
import functools

import jax
import jax.numpy as jnp
from jax.experimental import pallas as pl
from jax.experimental.pallas import tpu as pltpu


_LANE = 128
_TM_PREF = 256                 # preferred batch (sublane) tile
_NEG_INF = -1e30               # bias fill for padded logit columns -> softmax == 0
_VMEM_BUDGET = 40 * 1024 * 1024  # conservative guard (v7x has 64 MiB per TC)


def _round_up(n, m):
    return ((n + m - 1) // m) * m


def _pick_tm(batch, pref=_TM_PREF):
    """Batch tile: prefer `pref`, else largest sublane-aligned divisor, else the
    full batch (a full-extent block is always legal)."""
    if batch % pref == 0:
        return pref
    for t in (512, 256, 128, 64, 32, 16, 8):
        if batch % t == 0:
            return t
    return batch


# -----------------------------------------------------------------------------
# Fused forward kernel: input Linear + depth GatedLayers + output Linear+Softmax
# -----------------------------------------------------------------------------
def _chighway_kernel(x_ref, w_in_ref, b_in_ref, wl_ref, bl_ref,
                     w_out_ref, b_out_ref, o_ref, *, depth, hp, mxu_dtype):
    # Input projection: bf16 operands -> MXU fast path, f32 accumulation.
    x = x_ref[...].astype(mxu_dtype)
    y = jnp.dot(x, w_in_ref[...], preferred_element_type=jnp.float32)
    y = y + b_in_ref[...].astype(jnp.float32)

    # Highway stack. wl_ref[d] = [Wg_d | Wh_d] of shape (hp, 2*hp): one MXU pass
    # feeds both branches; the split is on a 128-lane boundary (hp lane-padded),
    # so the epilogue is pure VPU/EUP. `y` stays f32 for the whole stack.
    for d in range(depth):
        acc = jnp.dot(y.astype(mxu_dtype), wl_ref[d],
                      preferred_element_type=jnp.float32)
        acc = acc + bl_ref[d].astype(jnp.float32)
        t = jax.nn.sigmoid(acc[:, :hp])        # gate branch  (EUP)
        h = jnp.maximum(acc[:, hp:], 0.0)      # ReLU branch  (VPU)
        y = y + t * (h - y)                    # == t*h + (1-t)*y

    # Output projection + softmax over a lane-dense (tm, 128) slab. Padded
    # logit columns carry a -1e30 bias, so they contribute exactly 0.
    logits = jnp.dot(y.astype(mxu_dtype), w_out_ref[...],
                     preferred_element_type=jnp.float32)
    logits = logits + b_out_ref[...].astype(jnp.float32)
    m = jnp.max(logits, axis=-1, keepdims=True)
    e = jnp.exp(logits - m)
    o_ref[...] = (e / jnp.sum(e, axis=-1, keepdims=True)).astype(o_ref.dtype)


def chighway_forward(params, x):
    """Fused CHighway forward: one pallas_call for the whole network."""
    cfg = params["cfg"]
    in_dim, out_dim, depth = cfg["in_dim"], cfg["out_dim"], cfg["depth"]
    kp, hp, npad = cfg["kp"], cfg["hp"], cfg["npad"]
    mxu_dtype = cfg["mxu_dtype"]

    batch = x.shape[0]
    assert x.shape == (batch, in_dim)

    # Lane-align the 784-wide feature dim once (zero columns pair with the zero
    # rows padded into W_in, so the matmul is unchanged).
    x_p = jnp.pad(x, ((0, 0), (0, kp - in_dim))) if kp != in_dim else x

    tm = _pick_tm(batch)
    grid = (batch // tm,)

    # Guard the VMEM footprint (double-buffered x/out blocks + resident weights).
    wbytes = jnp.dtype(mxu_dtype).itemsize
    est_vmem = (2 * (tm * kp + tm * npad) * 4
                + 2 * (kp * hp + depth * hp * 2 * hp + hp * npad) * wbytes
                + 2 * (hp + depth * 2 * hp + npad) * 4)
    if est_vmem > _VMEM_BUDGET:
        raise ValueError(
            f"fused CHighway footprint {est_vmem / 2**20:.1f} MiB exceeds the "
            f"{_VMEM_BUDGET / 2**20:.0f} MiB VMEM budget; reduce batch tile / sizes")

    kernel = functools.partial(_chighway_kernel, depth=depth, hp=hp,
                               mxu_dtype=mxu_dtype)

    flops = 2 * batch * (kp * hp + depth * hp * 2 * hp + hp * npad)
    transcendentals = batch * (depth * hp + npad)       # sigmoid + softmax exp
    bytes_accessed = (batch * kp * 4 + batch * npad * 4
                      + (kp * hp + depth * hp * 2 * hp + hp * npad) * wbytes
                      + (hp + depth * 2 * hp + npad) * 4)

    out_padded = pl.pallas_call(
        kernel,
        out_shape=jax.ShapeDtypeStruct((batch, npad), jnp.float32),
        grid_spec=pltpu.PrefetchScalarGridSpec(
            num_scalar_prefetch=0,
            grid=grid,
            in_specs=[
                pl.BlockSpec((tm, kp), lambda i: (i, 0)),                # x tile
                pl.BlockSpec((kp, hp), lambda i: (0, 0)),                # W_in
                pl.BlockSpec((1, hp), lambda i: (0, 0)),                 # b_in
                pl.BlockSpec((depth, hp, 2 * hp), lambda i: (0, 0, 0)),  # [Wg|Wh] per layer
                pl.BlockSpec((depth, 1, 2 * hp), lambda i: (0, 0, 0)),   # [bg|bh] per layer
                pl.BlockSpec((hp, npad), lambda i: (0, 0)),              # W_out
                pl.BlockSpec((1, npad), lambda i: (0, 0)),               # b_out (pad = -1e30)
            ],
            out_specs=pl.BlockSpec((tm, npad), lambda i: (i, 0)),
        ),
        compiler_params=pltpu.CompilerParams(
            dimension_semantics=("parallel",)),
        cost_estimate=pl.CostEstimate(flops=flops,
                                      transcendentals=transcendentals,
                                      bytes_accessed=bytes_accessed),
    )(x_p, params["w_in"], params["b_in"], params["w_layers"],
      params["b_layers"], params["w_out"], params["b_out"])

    return out_padded[:, :out_dim]


# -----------------------------------------------------------------------------
# Parameter init (PyTorch-style), packing for the kernel, and references
# -----------------------------------------------------------------------------
def init_chighway_raw(key, depth, in_dim=784, hidden=32, out_dim=10,
                      bias_init=-2.0):
    assert depth >= 1

    def linear_init(k, fan_in, fan_out):
        kw, kb = jax.random.split(k)
        bound = 1.0 / float(fan_in) ** 0.5
        # PyTorch nn.Linear stores (out, in); keep the transpose (in, out).
        w = jax.random.uniform(kw, (fan_out, fan_in), jnp.float32, -bound, bound).T
        b = jax.random.uniform(kb, (fan_out,), jnp.float32, -bound, bound)
        return w, b

    keys = jax.random.split(key, depth + 2)
    w_in, b_in = linear_init(keys[0], in_dim, hidden)
    layers = []
    for d in range(depth):
        kg, kl = jax.random.split(keys[1 + d])
        wg, _ = linear_init(kg, hidden, hidden)
        bg = jnp.full((hidden,), bias_init, jnp.float32)      # gate bias := -2.0
        wh, bh = linear_init(kl, hidden, hidden)
        layers.append((wg, bg, wh, bh))
    w_out, b_out = linear_init(keys[-1], hidden, out_dim)

    return dict(w_in=w_in, b_in=b_in, layers=layers, w_out=w_out, b_out=b_out)


def pack_chighway_params(raw, mxu_dtype=jnp.bfloat16):
    """Pad to lane multiples, interleave [Wg|Wh] per layer, cast weights for the MXU."""
    w_in, b_in = raw["w_in"], raw["b_in"]
    layers, w_out, b_out = raw["layers"], raw["w_out"], raw["b_out"]
    in_dim, hidden = w_in.shape
    out_dim = w_out.shape[1]
    depth = len(layers)

    kp = _round_up(in_dim, _LANE)
    hp = _round_up(hidden, _LANE)
    npad = _round_up(out_dim, _LANE)

    def pad2(a, rows, cols, fill=0.0):
        out = jnp.full((rows, cols), fill, jnp.float32)
        return out.at[:a.shape[0], :a.shape[1]].set(a)

    w_in_p = pad2(w_in, kp, hp).astype(mxu_dtype)
    b_in_p = pad2(b_in.reshape(1, -1), 1, hp)

    w_layers = jnp.stack([
        jnp.concatenate([pad2(wg, hp, hp), pad2(wh, hp, hp)], axis=1)
        for (wg, bg, wh, bh) in layers]).astype(mxu_dtype)
    b_layers = jnp.stack([
        jnp.concatenate([pad2(bg.reshape(1, -1), 1, hp),
                         pad2(bh.reshape(1, -1), 1, hp)], axis=1)
        for (wg, bg, wh, bh) in layers])

    w_out_p = pad2(w_out, hp, npad).astype(mxu_dtype)
    b_out_p = pad2(b_out.reshape(1, -1), 1, npad, fill=_NEG_INF)

    cfg = dict(in_dim=in_dim, hidden=hidden, out_dim=out_dim, depth=depth,
               kp=kp, hp=hp, npad=npad, mxu_dtype=mxu_dtype)
    return dict(cfg=cfg, w_in=w_in_p, b_in=b_in_p, w_layers=w_layers,
                b_layers=b_layers, w_out=w_out_p, b_out=b_out_p)


def chighway_ref_f32(raw, x):
    """Pure-f32 JAX mirror of the PyTorch module."""
    y = x @ raw["w_in"] + raw["b_in"]
    for (wg, bg, wh, bh) in raw["layers"]:
        t = jax.nn.sigmoid(y @ wg + bg)
        h = jnp.maximum(y @ wh + bh, 0.0)
        y = t * h + (1.0 - t) * y
    logits = y @ raw["w_out"] + raw["b_out"]
    return jax.nn.softmax(logits, axis=-1)


def chighway_ref_mxu(raw, x, mxu_dtype):
    """Reference with the same cast-at-the-MXU-boundary math as the kernel."""
    def mm(a, w):
        return jnp.dot(a.astype(mxu_dtype), w.astype(mxu_dtype),
                       preferred_element_type=jnp.float32)
    y = mm(x, raw["w_in"]) + raw["b_in"]
    for (wg, bg, wh, bh) in raw["layers"]:
        t = jax.nn.sigmoid(mm(y, wg) + bg)
        h = jnp.maximum(mm(y, wh) + bh, 0.0)
        y = y + t * (h - y)
    logits = mm(y, raw["w_out"]) + raw["b_out"]
    m = jnp.max(logits, axis=-1, keepdims=True)
    e = jnp.exp(logits - m)
    return e / jnp.sum(e, axis=-1, keepdims=True)


if __name__ == "__main__":
    key = jax.random.PRNGKey(0)
    kx, kparam = jax.random.split(key)

    batch, in_dim, hidden, out_dim, depth = 8, 784, 32, 10, 3
    x = jax.random.normal(kx, (batch, in_dim), dtype=jnp.float32)
    raw = init_chighway_raw(kparam, depth, in_dim=in_dim, hidden=hidden,
                            out_dim=out_dim, bias_init=-2.0)

    ref = chighway_ref_f32(raw, x)

    # 1) f32 MXU path: tight check against the exact f32 reference.
    p32 = pack_chighway_params(raw, mxu_dtype=jnp.float32)
    out32 = jax.block_until_ready(chighway_forward(p32, x))
    assert out32.shape == (batch, out_dim)
    assert jnp.allclose(out32, ref, atol=2e-5, rtol=2e-5), \
        float(jnp.max(jnp.abs(out32 - ref)))

    # 2) bf16 MXU path (the perf default on v5e/v6e/v7x): f32 accumulation and
    #    f32 epilogue; activations are only quantized at the MXU boundary.
    pbf16 = pack_chighway_params(raw, mxu_dtype=jnp.bfloat16)
    outbf = jax.block_until_ready(chighway_forward(pbf16, x))
    assert outbf.shape == (batch, out_dim)
    ref_mxu = chighway_ref_mxu(raw, x, jnp.bfloat16)
    assert jnp.allclose(outbf, ref_mxu, atol=2e-3), \
        float(jnp.max(jnp.abs(outbf - ref_mxu)))
    assert jnp.allclose(outbf, ref, atol=2e-2), \
        float(jnp.max(jnp.abs(outbf - ref)))

    print("KERNEL_OK")
</pallas_src>

<mosaic_0001>
module attributes {stable_mosaic.version = 11 : i64} {
  func.func @_chighway_kernel(%arg0: i32, %arg1: memref<8x896xf32, #tpu.memory_space<vmem>>, %arg2: memref<896x128xf32, #tpu.memory_space<vmem>>, %arg3: memref<1x128xf32, #tpu.memory_space<vmem>>, %arg4: memref<3x128x256xf32, #tpu.memory_space<vmem>>, %arg5: memref<3x1x256xf32, #tpu.memory_space<vmem>>, %arg6: memref<128x128xf32, #tpu.memory_space<vmem>>, %arg7: memref<1x128xf32, #tpu.memory_space<vmem>>, %arg8: memref<8x128xf32, #tpu.memory_space<vmem>>) attributes {dimension_semantics = [#tpu.dimension_semantics<parallel>], iteration_bounds = array<i64: 1>, scalar_prefetch = 0 : i64, scratch_operands = 0 : i64, tpu.core_type = #tpu.core_type<tc>, window_params = [{transform_indices = @transform_0, window_bounds = array<i64: 8, 896>}, {pipeline_mode = #tpu.pipeline_mode<synchronous>, transform_indices = @transform_1, window_bounds = array<i64: 896, 128>}, {pipeline_mode = #tpu.pipeline_mode<synchronous>, transform_indices = @transform_2, window_bounds = array<i64: 1, 128>}, {pipeline_mode = #tpu.pipeline_mode<synchronous>, transform_indices = @transform_3, window_bounds = array<i64: 3, 128, 256>}, {pipeline_mode = #tpu.pipeline_mode<synchronous>, transform_indices = @transform_4, window_bounds = array<i64: 3, 1, 256>}, {pipeline_mode = #tpu.pipeline_mode<synchronous>, transform_indices = @transform_5, window_bounds = array<i64: 128, 128>}, {pipeline_mode = #tpu.pipeline_mode<synchronous>, transform_indices = @transform_6, window_bounds = array<i64: 1, 128>}, {transform_indices = @transform_7, window_bounds = array<i64: 8, 128>}]} {
    %c0 = arith.constant 0 : index
    %c0_0 = arith.constant 0 : index
    %0 = vector.load %arg1[%c0, %c0_0] : memref<8x896xf32, #tpu.memory_space<vmem>>, vector<8x896xf32>
    %c0_1 = arith.constant 0 : index
    %c0_2 = arith.constant 0 : index
    %1 = vector.load %arg2[%c0_1, %c0_2] : memref<896x128xf32, #tpu.memory_space<vmem>>, vector<896x128xf32>
    %cst = arith.constant dense<0.000000e+00> : vector<8x128xf32>
    %2 = tpu.matmul %0, %1, %cst {dimension_numbers = #tpu.dot_dimension_numbers<[1], [0], [0], [1], [0, 0, 1, 1], [], []>} : vector<8x896xf32>, vector<896x128xf32>, vector<8x128xf32> -> vector<8x128xf32>
    %c0_3 = arith.constant 0 : index
    %c0_4 = arith.constant 0 : index
    %3 = vector.load %arg3[%c0_3, %c0_4] : memref<1x128xf32, #tpu.memory_space<vmem>>, vector<1x128xf32>
    %4 = vector.broadcast %3 : vector<1x128xf32> to vector<8x128xf32>
    %5 = arith.addf %2, %4 : vector<8x128xf32>
    %c0_5 = arith.constant 0 : index
    %c0_6 = arith.constant 0 : index
    %c0_7 = arith.constant 0 : index
    %6 = vector.load %arg4[%c0_5, %c0_6, %c0_7] : memref<3x128x256xf32, #tpu.memory_space<vmem>>, vector<1x128x256xf32>
    %7 = vector.shape_cast %6 : vector<1x128x256xf32> to vector<128x256xf32>
    %cst_8 = arith.constant dense<0.000000e+00> : vector<8x256xf32>
    %8 = tpu.matmul %5, %7, %cst_8 {dimension_numbers = #tpu.dot_dimension_numbers<[1], [0], [0], [1], [0, 0, 1, 1], [], []>} : vector<8x128xf32>, vector<128x256xf32>, vector<8x256xf32> -> vector<8x256xf32>
    %c0_9 = arith.constant 0 : index
    %c0_10 = arith.constant 0 : index
    %c0_11 = arith.constant 0 : index
    %9 = vector.load %arg5[%c0_9, %c0_10, %c0_11] : memref<3x1x256xf32, #tpu.memory_space<vmem>>, vector<1x1x256xf32>
    %10 = vector.shape_cast %9 : vector<1x1x256xf32> to vector<1x256xf32>
    %11 = vector.broadcast %10 : vector<1x256xf32> to vector<8x256xf32>
    %12 = arith.addf %8, %11 : vector<8x256xf32>
    %13 = vector.extract_strided_slice %12 {offsets = [0, 0], sizes = [8, 128], strides = [1, 1]} : vector<8x256xf32> to vector<8x128xf32>
    %14 = arith.negf %13 : vector<8x128xf32>
    %15 = math.exp %14 : vector<8x128xf32>
    %cst_12 = arith.constant 1.000000e+00 : f32
    %16 = vector.broadcast %cst_12 : f32 to vector<8x128xf32>
    %17 = arith.addf %16, %15 : vector<8x128xf32>
    %18 = arith.divf %16, %17 : vector<8x128xf32>
    %19 = vector.extract_strided_slice %12 {offsets = [0, 128], sizes = [8, 128], strides = [1, 1]} : vector<8x256xf32> to vector<8x128xf32>
    %cst_13 = arith.constant 0.000000e+00 : f32
    %20 = vector.broadcast %cst_13 : f32 to vector<8x128xf32>
    %21 = arith.maximumf %19, %20 : vector<8x128xf32>
    %22 = arith.subf %21, %5 : vector<8x128xf32>
    %23 = arith.mulf %18, %22 : vector<8x128xf32>
    %24 = arith.addf %5, %23 : vector<8x128xf32>
    %c1 = arith.constant 1 : index
    %c0_14 = arith.constant 0 : index
    %c0_15 = arith.constant 0 : index
    %25 = vector.load %arg4[%c1, %c0_14, %c0_15] : memref<3x128x256xf32, #tpu.memory_space<vmem>>, vector<1x128x256xf32>
    %26 = vector.shape_cast %25 : vector<1x128x256xf32> to vector<128x256xf32>
    %cst_16 = arith.constant dense<0.000000e+00> : vector<8x256xf32>
    %27 = tpu.matmul %24, %26, %cst_16 {dimension_numbers = #tpu.dot_dimension_numbers<[1], [0], [0], [1], [0, 0, 1, 1], [], []>} : vector<8x128xf32>, vector<128x256xf32>, vector<8x256xf32> -> vector<8x256xf32>
    %c1_17 = arith.constant 1 : index
    %c0_18 = arith.constant 0 : index
    %c0_19 = arith.constant 0 : index
    %28 = vector.load %arg5[%c1_17, %c0_18, %c0_19] : memref<3x1x256xf32, #tpu.memory_space<vmem>>, vector<1x1x256xf32>
    %29 = vector.shape_cast %28 : vector<1x1x256xf32> to vector<1x256xf32>
    %30 = vector.broadcast %29 : vector<1x256xf32> to vector<8x256xf32>
    %31 = arith.addf %27, %30 : vector<8x256xf32>
    %32 = vector.extract_strided_slice %31 {offsets = [0, 0], sizes = [8, 128], strides = [1, 1]} : vector<8x256xf32> to vector<8x128xf32>
    %33 = arith.negf %32 : vector<8x128xf32>
    %34 = math.exp %33 : vector<8x128xf32>
    %cst_20 = arith.constant 1.000000e+00 : f32
    %35 = vector.broadcast %cst_20 : f32 to vector<8x128xf32>
    %36 = arith.addf %35, %34 : vector<8x128xf32>
    %37 = arith.divf %35, %36 : vector<8x128xf32>
    %38 = vector.extract_strided_slice %31 {offsets = [0, 128], sizes = [8, 128], strides = [1, 1]} : vector<8x256xf32> to vector<8x128xf32>
    %cst_21 = arith.constant 0.000000e+00 : f32
    %39 = vector.broadcast %cst_21 : f32 to vector<8x128xf32>
    %40 = arith.maximumf %38, %39 : vector<8x128xf32>
    %41 = arith.subf %40, %24 : vector<8x128xf32>
    %42 = arith.mulf %37, %41 : vector<8x128xf32>
    %43 = arith.addf %24, %42 : vector<8x128xf32>
    %c2 = arith.constant 2 : index
    %c0_22 = arith.constant 0 : index
    %c0_23 = arith.constant 0 : index
    %44 = vector.load %arg4[%c2, %c0_22, %c0_23] : memref<3x128x256xf32, #tpu.memory_space<vmem>>, vector<1x128x256xf32>
    %45 = vector.shape_cast %44 : vector<1x128x256xf32> to vector<128x256xf32>
    %cst_24 = arith.constant dense<0.000000e+00> : vector<8x256xf32>
    %46 = tpu.matmul %43, %45, %cst_24 {dimension_numbers = #tpu.dot_dimension_numbers<[1], [0], [0], [1], [0, 0, 1, 1], [], []>} : vector<8x128xf32>, vector<128x256xf32>, vector<8x256xf32> -> vector<8x256xf32>
    %c2_25 = arith.constant 2 : index
    %c0_26 = arith.constant 0 : index
    %c0_27 = arith.constant 0 : index
    %47 = vector.load %arg5[%c2_25, %c0_26, %c0_27] : memref<3x1x256xf32, #tpu.memory_space<vmem>>, vector<1x1x256xf32>
    %48 = vector.shape_cast %47 : vector<1x1x256xf32> to vector<1x256xf32>
    %49 = vector.broadcast %48 : vector<1x256xf32> to vector<8x256xf32>
    %50 = arith.addf %46, %49 : vector<8x256xf32>
    %51 = vector.extract_strided_slice %50 {offsets = [0, 0], sizes = [8, 128], strides = [1, 1]} : vector<8x256xf32> to vector<8x128xf32>
    %52 = arith.negf %51 : vector<8x128xf32>
    %53 = math.exp %52 : vector<8x128xf32>
    %cst_28 = arith.constant 1.000000e+00 : f32
    %54 = vector.broadcast %cst_28 : f32 to vector<8x128xf32>
    %55 = arith.addf %54, %53 : vector<8x128xf32>
    %56 = arith.divf %54, %55 : vector<8x128xf32>
    %57 = vector.extract_strided_slice %50 {offsets = [0, 128], sizes = [8, 128], strides = [1, 1]} : vector<8x256xf32> to vector<8x128xf32>
    %cst_29 = arith.constant 0.000000e+00 : f32
    %58 = vector.broadcast %cst_29 : f32 to vector<8x128xf32>
    %59 = arith.maximumf %57, %58 : vector<8x128xf32>
    %60 = arith.subf %59, %43 : vector<8x128xf32>
    %61 = arith.mulf %56, %60 : vector<8x128xf32>
    %62 = arith.addf %43, %61 : vector<8x128xf32>
    %c0_30 = arith.constant 0 : index
    %c0_31 = arith.constant 0 : index
    %63 = vector.load %arg6[%c0_30, %c0_31] : memref<128x128xf32, #tpu.memory_space<vmem>>, vector<128x128xf32>
    %cst_32 = arith.constant dense<0.000000e+00> : vector<8x128xf32>
    %64 = tpu.matmul %62, %63, %cst_32 {dimension_numbers = #tpu.dot_dimension_numbers<[1], [0], [0], [1], [0, 0, 1, 1], [], []>} : vector<8x128xf32>, vector<128x128xf32>, vector<8x128xf32> -> vector<8x128xf32>
    %c0_33 = arith.constant 0 : index
    %c0_34 = arith.constant 0 : index
    %65 = vector.load %arg7[%c0_33, %c0_34] : memref<1x128xf32, #tpu.memory_space<vmem>>, vector<1x128xf32>
    %66 = vector.broadcast %65 : vector<1x128xf32> to vector<8x128xf32>
    %67 = arith.addf %64, %66 : vector<8x128xf32>
    %cst_35 = arith.constant dense<0xFF800000> : vector<8xf32>
    %68 = vector.multi_reduction <maximumf>, %67, %cst_35 [1] : vector<8x128xf32> to vector<8xf32>
    %69 = vector.shape_cast %68 : vector<8xf32> to vector<8x1xf32>
    %70 = vector.broadcast %69 : vector<8x1xf32> to vector<8x128xf32>
    %71 = arith.subf %67, %70 : vector<8x128xf32>
    %72 = math.exp %71 : vector<8x128xf32>
    %cst_36 = arith.constant dense<0.000000e+00> : vector<8xf32>
    %73 = vector.multi_reduction <add>, %72, %cst_36 [1] : vector<8x128xf32> to vector<8xf32>
    %74 = vector.shape_cast %73 : vector<8xf32> to vector<8x1xf32>
    %75 = vector.broadcast %74 : vector<8x1xf32> to vector<8x128xf32>
    %76 = arith.divf %72, %75 : vector<8x128xf32>
    %c0_37 = arith.constant 0 : index
    %c0_38 = arith.constant 0 : index
    %77 = vector.load %arg8[%c0_37, %c0_38] : memref<8x128xf32, #tpu.memory_space<vmem>>, vector<8x128xf32>
    tpu.vector_store %arg8[%c0_37, %c0_38], %76 {strides = array<i32>} : memref<8x128xf32, #tpu.memory_space<vmem>>, vector<8x128xf32>,
    return
  }
  func.func @transform_0(%arg0: i32) -> (i32, i32) {
    %c0_i32 = arith.constant 0 : i32
    %c0_i32_0 = arith.constant 0 : i32
    return %arg0, %c0_i32 : i32, i32
  }
  func.func @transform_1(%arg0: i32) -> (i32, i32) {
    %c0_i32 = arith.constant 0 : i32
    %c0_i32_0 = arith.constant 0 : i32
    %c0_i32_1 = arith.constant 0 : i32
    return %c0_i32, %c0_i32_0 : i32, i32
  }
  func.func @transform_2(%arg0: i32) -> (i32, i32) {
    %c0_i32 = arith.constant 0 : i32
    %c0_i32_0 = arith.constant 0 : i32
    %c0_i32_1 = arith.constant 0 : i32
    return %c0_i32, %c0_i32_0 : i32, i32
  }
  func.func @transform_3(%arg0: i32) -> (i32, i32, i32) {
    %c0_i32 = arith.constant 0 : i32
    %c0_i32_0 = arith.constant 0 : i32
    %c0_i32_1 = arith.constant 0 : i32
    %c0_i32_2 = arith.constant 0 : i32
    return %c0_i32, %c0_i32_0, %c0_i32_1 : i32, i32, i32
  }
  func.func @transform_4(%arg0: i32) -> (i32, i32, i32) {
    %c0_i32 = arith.constant 0 : i32
    %c0_i32_0 = arith.constant 0 : i32
    %c0_i32_1 = arith.constant 0 : i32
    %c0_i32_2 = arith.constant 0 : i32
    return %c0_i32, %c0_i32_0, %c0_i32_1 : i32, i32, i32
  }
  func.func @transform_5(%arg0: i32) -> (i32, i32) {
    %c0_i32 = arith.constant 0 : i32
    %c0_i32_0 = arith.constant 0 : i32
    %c0_i32_1 = arith.constant 0 : i32
    return %c0_i32, %c0_i32_0 : i32, i32
  }
  func.func @transform_6(%arg0: i32) -> (i32, i32) {
    %c0_i32 = arith.constant 0 : i32
    %c0_i32_0 = arith.constant 0 : i32
    %c0_i32_1 = arith.constant 0 : i32
    return %c0_i32, %c0_i32_0 : i32, i32
  }
  func.func @transform_7(%arg0: i32) -> (i32, i32) {
    %c0_i32 = arith.constant 0 : i32
    %c0_i32_0 = arith.constant 0 : i32
    return %arg0, %c0_i32 : i32, i32
  }
}

</mosaic_0001>

<bundles_post_ra>
// kernel: tpu_custom_call.1
= control target key start
LH: loop header
LB: loop body
LE: loop exit
PB: predicated region body
PF: predicated region fallthrough
CT: control target
= control target key end

     0   :  { %12 = vsyncpa [#allocation3], 0  ;;  %s1763_s0 = inlined_call_operand.hbm [shape: f32[8,896], index: 0, kind: input, shape index: {}]   ;;  %s1764_s1 = inlined_call_operand.hbm [shape: f32[896,128], index: 1, kind: input, shape index: {}]   ;;  %s1765_s2 = inlined_call_operand.vmem [shape: f32[1,128], index: 2, kind: input, shape index: {}]   ;;  %s1766_s3 = inlined_call_operand.hbm [shape: f32[3,128,256], index: 3, kind: input, shape index: {}]   ;;  %s1767_s4 = inlined_call_operand.vmem [shape: f32[3,1,256], index: 4, kind: input, shape index: {}]   ;;  %s1768_s5 = inlined_call_operand.hbm [shape: f32[128,128], index: 5, kind: input, shape index: {}]   ;;  %s1769_s6 = inlined_call_operand.vmem [shape: f32[1,128], index: 6, kind: input, shape index: {}]   ;;  %s1770_s7 = inlined_call_operand.hbm [shape: f32[8,128], index: 7, kind: output, shape index: {}]  }
   0x1   :  { %13 = vsyncpa [#allocation6], 0 }
   0x2   :  { %14 = vsyncpa [#allocation9], 0 }
   0x3   :  { %15 = vsyncpa [#allocation4], 0  ;;  %s1587_s24 = smov [#allocation5]   ;;  %s1469_s28 = scalar_lea.hbm %s1764_s1, 14336 }
   0x4   :  { %s31_s25 = sshll.u32 %s1587_s24, 4  ;;  %p1470_p0 = scmp.ne.s32.totalorder %s1764_s1, %s1469_s28  ;;  %s32_s25 = int_to_ptr.vmem [resolvable:$true] %s31_s25 }
   0x5   :  { %p1473_p1 = scmp.lt.u32.totalorder %s1469_s28, %s1764_s1 }
   0x7   :  { %p1475_p2 = pnand %p1473_p1, %p1470_p0 }
   0x9   :  { %1478 = shalt.err (!%p1475_p2)
}
   0xa   :  { %s1479_s10 = scalar_lea.vmem %s32_s25, 14336  ;;  %p1484_p4 = scmp.lt.s32.totalorder %s32_s25, %s32_s25 }
   0xb   :  { %p1480_p3 = scmp.ne.s32.totalorder %s32_s25, %s1479_s10  ;;  %p1485_p5 = scmp.lt.s32.totalorder %s1479_s10, %s1479_s10 }
   0xd   :  { %p1486_p6 = por %p1485_p5, %p1484_p4 }
   0xf   :  { %p1487_p7 = pnand %p1486_p6, %p1480_p3 }
  0x11   :  { %1490 = shalt.err (!%p1487_p7)
}
  0x12   :  { %s1588_s11 = smov 128   ;;  %s1589_s12 = smov 8  }
  0x13   :  { %37 = dma.hbm_to_vmem [thread:$0]  %s1764_s1, 14336, %s32_s25, [#allocation6], %s1588_s11, %s1588_s11, %s1589_s12  }
  0x14   :  { %s1590_s15 = smov [#allocation2]   ;;  %s1591_s17 = smov [#allocation7]  }
  0x15   :  { %s22_s16 = sshll.u32 %s1590_s15, 4  ;;  %s45_s18 = sshll.u32 %s1591_s17, 4  ;;  %s23_s16 = int_to_ptr.vmem [resolvable:$true] %s22_s16  ;;  %s46_s18 = int_to_ptr.vmem [resolvable:$true] %s45_s18 }
  0x16   :  { %s1491_s21 = scalar_lea.hbm %s1763_s0, 896 }
  0x17   :  { %p1492_p8 = scmp.ne.s32.totalorder %s1763_s0, %s1491_s21  ;;  %p1495_p9 = scmp.lt.u32.totalorder %s1491_s21, %s1763_s0 }
  0x19   :  { %p1497_p10 = pnand %p1495_p9, %p1492_p8 }
  0x1b   :  { %1500 = shalt.err (!%p1497_p10)
}
  0x1c   :  { %s1501_s1 = scalar_lea.vmem %s23_s16, 896  ;;  %p1506_p12 = scmp.lt.s32.totalorder %s23_s16, %s23_s16 }
  0x1d   :  { %p1502_p11 = scmp.ne.s32.totalorder %s23_s16, %s1501_s1  ;;  %p1507_p13 = scmp.lt.s32.totalorder %s1501_s1, %s1501_s1 }
  0x1f   :  { %p1508_p0 = por %p1507_p13, %p1506_p12 }
  0x21   :  { %p1509_p1 = pnand %p1508_p0, %p1502_p11 }
  0x23   :  { %1512 = shalt.err (!%p1509_p1)
}
  0x24   :  { %25 = dma.hbm_to_vmem [thread:$0]  %s1763_s0, 896, %s23_s16, [#allocation3]  }
  0x25   :  { %s1513_s30 = scalar_lea.hbm %s1766_s3, 12288 }
  0x26   :  { %p1514_p2 = scmp.ne.s32.totalorder %s1766_s3, %s1513_s30  ;;  %p1517_p3 = scmp.lt.u32.totalorder %s1513_s30, %s1766_s3 }
  0x28   :  { %p1519_p4 = pnand %p1517_p3, %p1514_p2 }
  0x2a   :  { %1522 = shalt.err (!%p1519_p4)
}
  0x2b   :  { %s1523_s14 = scalar_lea.vmem %s46_s18, 12288  ;;  %p1528_p6 = scmp.lt.s32.totalorder %s46_s18, %s46_s18 }
  0x2c   :  { %p1524_p5 = scmp.ne.s32.totalorder %s46_s18, %s1523_s14  ;;  %p1529_p7 = scmp.lt.s32.totalorder %s1523_s14, %s1523_s14 }
  0x2e   :  { %p1530_p8 = por %p1529_p7, %p1528_p6 }
  0x30   :  { %p1531_p9 = pnand %p1530_p8, %p1524_p5 }
  0x32   :  { %1534 = shalt.err (!%p1531_p9)
}
  0x33   :  { %s1592_s0 = smov 256   ;;  %s1593_s15 = smov 16  }
  0x34   :  { %51 = dma.hbm_to_vmem [thread:$0]  %s1766_s3, 12288, %s46_s18, [#allocation6], %s1592_s0, %s1592_s0, %s1593_s15  }
  0x35   :  { %s1594_s19 = smov [#allocation8]   ;;  %s1535_s23 = scalar_lea.hbm %s1768_s5, 2048 }
  0x36   :  { %s59_s20 = sshll.u32 %s1594_s19, 4  ;;  %p1536_p10 = scmp.ne.s32.totalorder %s1768_s5, %s1535_s23  ;;  %s60_s20 = int_to_ptr.vmem [resolvable:$true] %s59_s20 }
  0x37   :  { %p1539_p11 = scmp.lt.u32.totalorder %s1535_s23, %s1768_s5 }
  0x39   :  { %p1541_p12 = pnand %p1539_p11, %p1536_p10 }
  0x3b   :  { %1544 = shalt.err (!%p1541_p12)
}
  0x3c   :  { %s1545_s27 = scalar_lea.vmem %s60_s20, 2048  ;;  %p1550_p0 = scmp.lt.s32.totalorder %s60_s20, %s60_s20 }
  0x3d   :  { %p1546_p13 = scmp.ne.s32.totalorder %s60_s20, %s1545_s27  ;;  %p1551_p1 = scmp.lt.s32.totalorder %s1545_s27, %s1545_s27 }
  0x3f   :  { %p1552_p2 = por %p1551_p1, %p1550_p0 }
  0x41   :  { %p1553_p3 = pnand %p1552_p2, %p1546_p13 }
  0x43   :  { %1556 = shalt.err (!%p1553_p3)
}
  0x44   :  { %65 = dma.hbm_to_vmem [thread:$0]  %s1768_s5, 2048, %s60_s20, [#allocation9], %s1588_s11, %s1588_s11, %s1589_s12  }
  0x45   :  { %1579 = dma.done.wait [#allocation3], 896  }
  0x46   :  { %1580 = vsyncadd [#allocation3], 4294966400 }
  0x47   :  { %1581 = dma.done.wait [#allocation6], 26624  }
  0x48   :  { %1582 = vsyncadd [#allocation6], 4294940672 }
  0x49   :  { %1583 = dma.done.wait [#allocation9], 2048  }
  0x4a   :  { %1584 = vsyncadd [#allocation9], 4294965248  ;;  %v103_v0 = vld [vmem:[#allocation5 + $0x80] sm:$0xff]  ;;  %v104_v1 = vld [vmem:[#allocation5 + $0x88] sm:$0xff]  ;;  %vm1596_vm0 = vmmov 0   ;;  %s1598_s10 = smov [#allocation10]  }
  0x4b   :  { %v87_v2 = vld [vmem:[#allocation5] sm:$0xff]  ;;  %v1201_v3 = vpack.c.bf16 %v104_v1, %v103_v0  ;;  %v88_v4 = vld [vmem:[#allocation5 + $0x8] sm:$0xff]  ;;  %v105_v11 = vld [vmem:[#allocation5 + $0x90] sm:$0xff]  ;;  %s974_s13 = sshll.u32 %s1598_s10, 4  ;;  %s975_s13 = int_to_ptr.vmem [resolvable:$true] %s974_s13 }
  0x4c   :  { %v135_v5 = vld [vmem:[#allocation5 + $0x180] sm:$0xff]  ;;  %v136_v6 = vld [vmem:[#allocation5 + $0x188] sm:$0xff]  ;;  %v1203_v7 = vpack.c.bf16 %v88_v4, %v87_v2  ;;  %v106_v13 = vld [vmem:[#allocation5 + $0x98] sm:$0xff]  ;;  %s1557_s14 = scalar_lea.vmem %s975_s13, 128  ;;  %p1562_p5 = scmp.lt.s32.totalorder %s975_s13, %s975_s13 }
  0x4d   :  { %v1233_v8 = vpack.c.bf16 %v136_v6, %v135_v5  ;;  %v119_v9 = vld [vmem:[#allocation5 + $0x100] sm:$0xff]  ;;  %v120_v10 = vld [vmem:[#allocation5 + $0x108] sm:$0xff]  ;;  %1202 = vmatprep.subr.bf16.mxu0 %v1201_v3  ;;  %v89_v14 = vld [vmem:[#allocation5 + $0x10] sm:$0xff]  ;;  %v1205_v16 = vpack.c.bf16 %v106_v13, %v105_v11  ;;  %p1558_p4 = scmp.ne.s32.totalorder %s975_s13, %s1557_s14  ;;  %p1563_p6 = scmp.lt.s32.totalorder %s1557_s14, %s1557_s14 }
  0x4e   :  { %v1235_v12 = vpack.c.bf16 %v120_v10, %v119_v9  ;;  %v90_v15 = vld [vmem:[#allocation5 + $0x18] sm:$0xff]  ;;  %1204 = vmatpush3.bf16.msra.mxu0 %v1203_v7  ;;  %v137_v18 = vld [vmem:[#allocation5 + $0x190] sm:$0xff]  ;;  %v107_v23 = vld [vmem:[#allocation5 + $0xa0] sm:$0xff] }
  0x4f   :  { %1234 = vmatprep.subr.bf16.mxu1 %v1233_v8  ;;  %v1207_v17 = vpack.c.bf16 %v90_v15, %v89_v14  ;;  %v138_v19 = vld [vmem:[#allocation5 + $0x198] sm:$0xff]  ;;  %v121_v20 = vld [vmem:[#allocation5 + $0x110] sm:$0xff]  ;;  %v108_v24 = vld [vmem:[#allocation5 + $0xa8] sm:$0xff]  ;;  %1206 = vmatprep.subr.bf16.mxu0 %v1205_v16  ;;  %p1564_p7 = por %p1563_p6, %p1562_p5 }
  0x50   :  { %1236 = vmatpush3.bf16.msra.mxu1 %v1235_v12  ;;  %v1237_v21 = vpack.c.bf16 %v138_v19, %v137_v18  ;;  %v122_v22 = vld [vmem:[#allocation5 + $0x118] sm:$0xff]  ;;  %v1209_v26 = vpack.c.bf16 %v108_v24, %v107_v23  ;;  %v91_v27 = vld [vmem:[#allocation5 + $0x20] sm:$0xff]  ;;  %v92_v28 = vld [vmem:[#allocation5 + $0x28] sm:$0xff] }
  0x51   :  { %v1239_v25 = vpack.c.bf16 %v122_v22, %v121_v20  ;;  %v139_v29 = vld [vmem:[#allocation5 + $0x1a0] sm:$0xff]  ;;  %v140_v30 = vld [vmem:[#allocation5 + $0x1a8] sm:$0xff]  ;;  %v1211_v33 = vpack.c.bf16 %v92_v28, %v91_v27  ;;  %v109_v35 = vld [vmem:[#allocation5 + $0xb0] sm:$0xff]  ;;  %p1565_p8 = pnand %p1564_p7, %p1558_p4 }
  0x52   :  { %1238 = vmatprep.subr.bf16.mxu1 %v1237_v21  ;;  %v123_v31 = vld [vmem:[#allocation5 + $0x120] sm:$0xff]  ;;  %v124_v32 = vld [vmem:[#allocation5 + $0x128] sm:$0xff]  ;;  %1208 = vmatpush3.bf16.msra.mxu0 %v1207_v17  ;;  %v1241_v34 = vpack.c.bf16 %v140_v30, %v139_v29  ;;  %v110_v36 = vld [vmem:[#allocation5 + $0xb8] sm:$0xff] }
  0x53   :  { %v93_v37 = vld [vmem:[#allocation5 + $0x30] sm:$0xff]  ;;  %1210 = vmatprep.subr.bf16.mxu0 %v1209_v26  ;;  %v1243_v38 = vpack.c.bf16 %v124_v32, %v123_v31  ;;  %v1213_v39 = vpack.c.bf16 %v110_v36, %v109_v35  ;;  %v94_v40 = vld [vmem:[#allocation5 + $0x38] sm:$0xff]  ;;  %v111_v46 = vld [vmem:[#allocation5 + $0xc0] sm:$0xff] }
  0x54   :  { %1240 = vmatpush3.bf16.msra.mxu1 %v1239_v25  ;;  %v141_v41 = vld [vmem:[#allocation5 + $0x1b0] sm:$0xff]  ;;  %v142_v42 = vld [vmem:[#allocation5 + $0x1b8] sm:$0xff]  ;;  %v112_v47 = vld [vmem:[#allocation5 + $0xc8] sm:$0xff]  ;;  %v1215_v48 = vpack.c.bf16 %v94_v40, %v93_v37 }
  0x55   :  { %1242 = vmatprep.subr.bf16.mxu1 %v1241_v34  ;;  %v1245_v43 = vpack.c.bf16 %v142_v42, %v141_v41  ;;  %v125_v44 = vld [vmem:[#allocation5 + $0x130] sm:$0xff]  ;;  %v126_v45 = vld [vmem:[#allocation5 + $0x138] sm:$0xff]  ;;  %v143_v49 = vld [vmem:[#allocation5 + $0x1c0] sm:$0xff]  ;;  %v1217_v52 = vpack.c.bf16 %v112_v47, %v111_v46 }
  0x56   :  { %1212 = vmatpush3.bf16.msra.mxu0 %v1211_v33  ;;  %v144_v50 = vld [vmem:[#allocation5 + $0x1c8] sm:$0xff]  ;;  %v1247_v51 = vpack.c.bf16 %v126_v45, %v125_v44  ;;  %v95_v53 = vld [vmem:[#allocation5 + $0x40] sm:$0xff]  ;;  %v113_v58 = vld [vmem:[#allocation5 + $0xd0] sm:$0xff] }
  0x57   :  { %1214 = vmatprep.subr.bf16.mxu0 %v1213_v39  ;;  %v96_v54 = vld [vmem:[#allocation5 + $0x48] sm:$0xff]  ;;  %v127_v55 = vld [vmem:[#allocation5 + $0x140] sm:$0xff]  ;;  %v1249_v56 = vpack.c.bf16 %v144_v50, %v143_v49  ;;  %v114_v59 = vld [vmem:[#allocation5 + $0xd8] sm:$0xff] }
  0x58   :  { %1244 = vmatpush3.bf16.msra.mxu1 %v1243_v38  ;;  %v128_v57 = vld [vmem:[#allocation5 + $0x148] sm:$0xff]  ;;  %v145_v60 = vld [vmem:[#allocation5 + $0x1d0] sm:$0xff]  ;;  %v146_v61 = vld [vmem:[#allocation5 + $0x1d8] sm:$0xff]  ;;  %v1219_v62 = vpack.c.bf16 %v96_v54, %v95_v53  ;;  %v1221_v0 = vpack.c.bf16 %v114_v59, %v113_v58 }
  0x59   :  { %1246 = vmatprep.subr.bf16.mxu1 %v1245_v43  ;;  %v1251_v63 = vpack.c.bf16 %v128_v57, %v127_v55  ;;  %v97_v1 = vld [vmem:[#allocation5 + $0x50] sm:$0xff]  ;;  %v98_v2 = vld [vmem:[#allocation5 + $0x58] sm:$0xff]  ;;  %v1253_v4 = vpack.c.bf16 %v146_v61, %v145_v60  ;;  %v115_v6 = vld [vmem:[#allocation5 + $0xe0] sm:$0xff] }
  0x5a   :  { %1216 = vmatpush3.bf16.msra.mxu0 %v1215_v48  ;;  %v129_v3 = vld [vmem:[#allocation5 + $0x150] sm:$0xff]  ;;  %v130_v5 = vld [vmem:[#allocation5 + $0x158] sm:$0xff]  ;;  %v116_v7 = vld [vmem:[#allocation5 + $0xe8] sm:$0xff]  ;;  %v1223_v10 = vpack.c.bf16 %v98_v2, %v97_v1  ;;  %v1597_v1 = vmov 0.0  }
  0x5b   :  { %1218 = vmatprep.subr.bf16.mxu0 %v1217_v52  ;;  %v147_v8 = vld [vmem:[#allocation5 + $0x1e0] sm:$0xff]  ;;  %v148_v9 = vld [vmem:[#allocation5 + $0x1e8] sm:$0xff]  ;;  %v81_v12 = vld [vmem:[#allocation2 + $0x8] sm:$0xff]  ;;  %v1255_v13 = vpack.c.bf16 %v130_v5, %v129_v3  ;;  %v1225_v14 = vpack.c.bf16 %v116_v7, %v115_v6 }
  0x5c   :  { %1248 = vmatpush3.bf16.msra.mxu1 %v1247_v51  ;;  %v99_v11 = vld [vmem:[#allocation5 + $0x60] sm:$0xff]  ;;  %v100_v15 = vld [vmem:[#allocation5 + $0x68] sm:$0xff]  ;;  %v1257_v18 = vpack.c.bf16 %v148_v9, %v147_v8  ;;  %v117_v19 = vld [vmem:[#allocation5 + $0xf0] sm:$0xff]  ;;  %270 = vmatprep.mubr.f32.mxu0 %v81_v12  ;;  %v1595_v51 = vmov 0.0|0.0  }
  0x5d   :  { %1250 = vmatprep.subr.bf16.mxu1 %v1249_v56  ;;  %v131_v16 = vld [vmem:[#allocation5 + $0x160] sm:$0xff]  ;;  %v132_v17 = vld [vmem:[#allocation5 + $0x168] sm:$0xff]  ;;  %v118_v20 = vld [vmem:[#allocation5 + $0xf8] sm:$0xff]  ;;  %v1227_v24 = vpack.c.bf16 %v100_v15, %v99_v11 }
  0x5e   :  { %1220 = vmatpush3.bf16.msra.mxu0 %v1219_v62  ;;  %v83_v21 = vld [vmem:[#allocation2 + $0x18] sm:$0xff]  ;;  %v149_v22 = vld [vmem:[#allocation5 + $0x1f0] sm:$0xff]  ;;  %v150_v23 = vld [vmem:[#allocation5 + $0x1f8] sm:$0xff]  ;;  %v1259_v25 = vpack.c.bf16 %v132_v17, %v131_v16  ;;  %v1229_v26 = vpack.c.bf16 %v118_v20, %v117_v19 }
  0x5f   :  { %1222 = vmatprep.subr.bf16.mxu0 %v1221_v0  ;;  %340 = vmatprep.mubr.f32.mxu1 %v83_v21  ;;  %v101_v27 = vld [vmem:[#allocation5 + $0x70] sm:$0xff]  ;;  %v102_v28 = vld [vmem:[#allocation5 + $0x78] sm:$0xff]  ;;  %v1261_v30 = vpack.c.bf16 %v150_v23, %v149_v22  ;;  %v167_v32 = vld [vmem:[#allocation5 + $0x280] sm:$0xff] }
  0x60   :  { %1252 = vmatpush3.bf16.msra.mxu1 %v1251_v63  ;;  %v133_v29 = vld [vmem:[#allocation5 + $0x170] sm:$0xff]  ;;  %v134_v31 = vld [vmem:[#allocation5 + $0x178] sm:$0xff]  ;;  %v168_v33 = vld [vmem:[#allocation5 + $0x288] sm:$0xff]  ;;  %v1231_v34 = vpack.c.bf16 %v102_v28, %v101_v27 }
  0x61   :  { %1254 = vmatprep.subr.bf16.mxu1 %v1253_v4  ;;  %v1263_v35 = vpack.c.bf16 %v134_v31, %v133_v29  ;;  %v1265_v36 = vpack.c.bf16 %v168_v33, %v167_v32  ;;  %v151_v37 = vld [vmem:[#allocation5 + $0x200] sm:$0xff]  ;;  %v152_v38 = vld [vmem:[#allocation5 + $0x208] sm:$0xff]  ;;  %v169_v39 = vld [vmem:[#allocation5 + $0x290] sm:$0xff] }
  0x62   :  { %1224 = vmatpush3.bf16.msra.mxu0 %v1223_v10  ;;  %v170_v40 = vld [vmem:[#allocation5 + $0x298] sm:$0xff]  ;;  %v183_v41 = vld [vmem:[#allocation5 + $0x300] sm:$0xff]  ;;  %v184_v42 = vld [vmem:[#allocation5 + $0x308] sm:$0xff]  ;;  %v1267_v44 = vpack.c.bf16 %v152_v38, %v151_v37 }
  0x63   :  { %1226 = vmatprep.subr.bf16.mxu0 %v1225_v14  ;;  %v80_v43 = vld [vmem:[#allocation2] sm:$0xff]  ;;  %v82_v45 = vld [vmem:[#allocation2 + $0x10] sm:$0xff]  ;;  %v1269_v46 = vpack.c.bf16 %v170_v40, %v169_v39  ;;  %v153_v47 = vld [vmem:[#allocation5 + $0x210] sm:$0xff]  ;;  %v1298_v49 = vpack.c.bf16 %v184_v42, %v183_v41 }
  0x64   :  { %1256 = vmatpush3.bf16.msra.mxu1 %v1255_v13  ;;  %v154_v48 = vld [vmem:[#allocation5 + $0x218] sm:$0xff]  ;;  %v171_v50 = vld [vmem:[#allocation5 + $0x2a0] sm:$0xff]  ;;  %v172_v52 = vld [vmem:[#allocation5 + $0x2a8] sm:$0xff] }
  0x65   :  { %1258 = vmatprep.subr.bf16.mxu1 %v1257_v18  ;;  %v185_v53 = vld [vmem:[#allocation5 + $0x310] sm:$0xff]  ;;  %v186_v54 = vld [vmem:[#allocation5 + $0x318] sm:$0xff]  ;;  %v1271_v55 = vpack.c.bf16 %v154_v48, %v153_v47  ;;  %v155_v56 = vld [vmem:[#allocation5 + $0x220] sm:$0xff]  ;;  %v1273_v57 = vpack.c.bf16 %v172_v52, %v171_v50 }
  0x66   :  { %1228 = vmatpush3.bf16.msra.mxu0 %v1227_v24  ;;  %v156_v58 = vld [vmem:[#allocation5 + $0x228] sm:$0xff]  ;;  %v1301_v59 = vpack.c.bf16 %v186_v54, %v185_v53  ;;  %v173_v60 = vld [vmem:[#allocation5 + $0x2b0] sm:$0xff]  ;;  %v174_v61 = vld [vmem:[#allocation5 + $0x2b8] sm:$0xff] }
  0x67   :  { %1230 = vmatprep.subr.bf16.mxu0 %v1229_v26  ;;  %v187_v62 = vld [vmem:[#allocation5 + $0x320] sm:$0xff]  ;;  %v188_v63 = vld [vmem:[#allocation5 + $0x328] sm:$0xff]  ;;  %v85_v0 = vld [vmem:[#allocation2 + $0x28] sm:$0xff]  ;;  %v1275_v2 = vpack.c.bf16 %v156_v58, %v155_v56  ;;  %v1277_v3 = vpack.c.bf16 %v174_v61, %v173_v60 }
  0x68   :  { %1260 = vmatpush3.bf16.msra.mxu1 %v1259_v25  ;;  %v157_v4 = vld [vmem:[#allocation5 + $0x230] sm:$0xff]  ;;  %v158_v5 = vld [vmem:[#allocation5 + $0x238] sm:$0xff]  ;;  %v1304_v6 = vpack.c.bf16 %v188_v63, %v187_v62  ;;  %v175_v7 = vld [vmem:[#allocation5 + $0x2c0] sm:$0xff] }
  0x69   :  { %1262 = vmatprep.subr.bf16.mxu1 %v1261_v30  ;;  %v176_v8 = vld [vmem:[#allocation5 + $0x2c8] sm:$0xff]  ;;  %v189_v9 = vld [vmem:[#allocation5 + $0x330] sm:$0xff]  ;;  %v190_v10 = vld [vmem:[#allocation5 + $0x338] sm:$0xff]  ;;  %v1279_v11 = vpack.c.bf16 %v158_v5, %v157_v4 }
  0x6a   :  { %1232 = vmatpush3.bf16.msra.mxu0 %v1231_v34  ;;  %v1281_v12 = vpack.c.bf16 %v176_v8, %v175_v7  ;;  %v159_v13 = vld [vmem:[#allocation5 + $0x240] sm:$0xff]  ;;  %v160_v14 = vld [vmem:[#allocation5 + $0x248] sm:$0xff]  ;;  %v1307_v15 = vpack.c.bf16 %v190_v10, %v189_v9  ;;  %v177_v16 = vld [vmem:[#allocation5 + $0x2d0] sm:$0xff] }
  0x6b   :  { %1266 = vmatprep.subr.bf16.mxu0 %v1265_v36  ;;  %v178_v17 = vld [vmem:[#allocation5 + $0x2d8] sm:$0xff]  ;;  %v191_v18 = vld [vmem:[#allocation5 + $0x340] sm:$0xff]  ;;  %v192_v19 = vld [vmem:[#allocation5 + $0x348] sm:$0xff]  ;;  %v1283_v20 = vpack.c.bf16 %v160_v14, %v159_v13 }
  0x6c   :  { %1264 = vmatpush3.bf16.msra.mxu1 %v1263_v35  ;;  %v1285_v21 = vpack.c.bf16 %v178_v17, %v177_v16  ;;  %v161_v22 = vld [vmem:[#allocation5 + $0x250] sm:$0xff]  ;;  %v162_v23 = vld [vmem:[#allocation5 + $0x258] sm:$0xff]  ;;  %v1310_v24 = vpack.c.bf16 %v192_v19, %v191_v18  ;;  %v179_v25 = vld [vmem:[#allocation5 + $0x2e0] sm:$0xff] }
  0x6d   :  { %1297 = vmatprep.subr.bf16.mxu1 %v1595_v51  ;;  %271 = vmatmul.mubr.f32.vlgmr.msra.gmra.mrb[0].mxu0 %v80_v43  ;;  %v180_v26 = vld [vmem:[#allocation5 + $0x2e8] sm:$0xff]  ;;  %v193_v27 = vld [vmem:[#allocation5 + $0x350] sm:$0xff]  ;;  %v194_v28 = vld [vmem:[#allocation5 + $0x358] sm:$0xff]  ;;  %v1287_v29 = vpack.c.bf16 %v162_v23, %v161_v22 }
  0x6e   :  { %1268 = vmatpush3.bf16.msra.mxu0 %v1267_v44  ;;  %410 = vmatprep.mubr.f32.mxu0 %v85_v0  ;;  %v1289_v30 = vpack.c.bf16 %v180_v26, %v179_v25  ;;  %v163_v31 = vld [vmem:[#allocation5 + $0x260] sm:$0xff]  ;;  %v164_v32 = vld [vmem:[#allocation5 + $0x268] sm:$0xff]  ;;  %v1313_v33 = vpack.c.bf16 %v194_v28, %v193_v27  ;;  %v181_v34 = vld [vmem:[#allocation5 + $0x2f0] sm:$0xff] }
  0x6f   :  { %341 = vmatmul.mubr.f32.vlgmr.msra.gmra.mrb[0].mxu1 %v82_v45  ;;  %1270 = vmatprep.subr.bf16.mxu0 %v1269_v46  ;;  %v182_v35 = vld [vmem:[#allocation5 + $0x2f8] sm:$0xff]  ;;  %v195_v36 = vld [vmem:[#allocation5 + $0x360] sm:$0xff]  ;;  %v196_v37 = vld [vmem:[#allocation5 + $0x368] sm:$0xff]  ;;  %v1291_v38 = vpack.c.bf16 %v164_v32, %v163_v31 }
  0x70   :  { %1299 = vmatpush3.bf16.msra.mxu1 %v1298_v49  ;;  %1163 = vmatprep.mubr.msk.f32.mxu1 %vm1596_vm0, %v1597_v1  ;;  %v1293_v39 = vpack.c.bf16 %v182_v35, %v181_v34  ;;  %v165_v40 = vld [vmem:[#allocation5 + $0x270] sm:$0xff]  ;;  %v166_v41 = vld [vmem:[#allocation5 + $0x278] sm:$0xff]  ;;  %v1316_v42 = vpack.c.bf16 %v196_v37, %v195_v36  ;;  %v84_v47 = vld [vmem:[#allocation2 + $0x20] sm:$0xff] }
  0x71   :  { %1300 = vmatprep.subr.bf16.mxu1 %v1595_v51  ;;  %v197_v43 = vld [vmem:[#allocation5 + $0x370] sm:$0xff]  ;;  %v198_v44 = vld [vmem:[#allocation5 + $0x378] sm:$0xff]  ;;  %v1295_v45 = vpack.c.bf16 %v166_v41, %v165_v40  ;;  %v487_v49 = vld [vmem:[#allocation7 + $0x8] sm:$0xff] }
  0x72   :  { %1272 = vmatpush3.bf16.msra.mxu0 %v1271_v55  ;;  %v1319_v46 = vpack.c.bf16 %v198_v44, %v197_v43  ;;  %v86_v48 = vld [vmem:[#allocation2 + $0x30] sm:$0xff]  ;;  %v486_v53 = vld [vmem:[#allocation7] sm:$0xff]  ;;  %v488_v54 = vld [vmem:[#allocation7 + $0x10] sm:$0xff] }
  0x73   :  { %1274 = vmatprep.subr.bf16.mxu0 %v1273_v57  ;;  %v489_v50 = vld [vmem:[#allocation7 + $0x18] sm:$0xff]  ;;  %v491_v55 = vld [vmem:[#allocation7 + $0x28] sm:$0xff]  ;;  %v1323_v56 = vpack.c.bf16 %v488_v54, %v486_v53  ;;  %v490_v58 = vld [vmem:[#allocation7 + $0x20] sm:$0xff] }
  0x74   :  { %1302 = vmatpush3.bf16.msra.mxu1 %v1301_v59  ;;  %v1321_v52 = vpack.c.bf16 %v489_v50, %v487_v49  ;;  %v493_v57 = vld [vmem:[#allocation7 + $0x38] sm:$0xff]  ;;  %v492_v59 = vld [vmem:[#allocation7 + $0x30] sm:$0xff]  ;;  %v495_v61 = vld [vmem:[#allocation7 + $0x48] sm:$0xff] }
  0x75   :  { %1303 = vmatprep.subr.bf16.mxu1 %v1595_v51  ;;  %v1325_v60 = vpack.c.bf16 %v493_v57, %v491_v55  ;;  %v497_v62 = vld [vmem:[#allocation7 + $0x58] sm:$0xff]  ;;  %v1327_v63 = vpack.c.bf16 %v492_v59, %v490_v58  ;;  %v499_v4 = vld [vmem:[#allocation7 + $0x68] sm:$0xff]  ;;  %v498_v8 = vld [vmem:[#allocation7 + $0x60] sm:$0xff] }
  0x76   :  { %1276 = vmatpush3.bf16.msra.mxu0 %v1275_v2  ;;  %v1329_v0 = vpack.c.bf16 %v497_v62, %v495_v61  ;;  %v494_v2 = vld [vmem:[#allocation7 + $0x40] sm:$0xff]  ;;  %v501_v5 = vld [vmem:[#allocation7 + $0x78] sm:$0xff]  ;;  %v500_v9 = vld [vmem:[#allocation7 + $0x70] sm:$0xff] }
  0x77   :  { %1278 = vmatprep.subr.bf16.mxu0 %v1277_v3  ;;  %v496_v3 = vld [vmem:[#allocation7 + $0x50] sm:$0xff]  ;;  %v1333_v7 = vpack.c.bf16 %v501_v5, %v499_v4  ;;  %v503_v10 = vld [vmem:[#allocation7 + $0x88] sm:$0xff]  ;;  %v502_v14 = vld [vmem:[#allocation7 + $0x80] sm:$0xff] }
  0x78   :  { %1305 = vmatpush3.bf16.msra.mxu1 %v1304_v6  ;;  %v1331_v6 = vpack.c.bf16 %v496_v3, %v494_v2  ;;  %v507_v16 = vld [vmem:[#allocation7 + $0xa8] sm:$0xff]  ;;  %v509_v17 = vld [vmem:[#allocation7 + $0xb8] sm:$0xff]  ;;  %v510_v26 = vld [vmem:[#allocation7 + $0xc0] sm:$0xff] }
  0x79   :  { %1306 = vmatprep.subr.bf16.mxu1 %v1595_v51  ;;  %v1341_v19 = vpack.c.bf16 %v509_v17, %v507_v16  ;;  %v511_v23 = vld [vmem:[#allocation7 + $0xc8] sm:$0xff]  ;;  %v512_v27 = vld [vmem:[#allocation7 + $0xd0] sm:$0xff]  ;;  %v514_v32 = vld [vmem:[#allocation7 + $0xe0] sm:$0xff] }
  0x7a   :  { %1280 = vmatpush3.bf16.msra.mxu0 %v1279_v11  ;;  %v505_v11 = vld [vmem:[#allocation7 + $0x98] sm:$0xff]  ;;  %v1347_v28 = vpack.c.bf16 %v512_v27, %v510_v26  ;;  %v985_v36 = vld [vmem:[%s1765_s2] ss:$0 sm:$0xff]  ;;  %v612_v55 = vld [vmem:[#allocation7 + $0x100] sm:$0xff] }
  0x7b   :  { %1282 = vmatprep.subr.bf16.mxu0 %v1281_v12  ;;  %v1335_v12 = vpack.c.bf16 %v500_v9, %v498_v8  ;;  %v1337_v13 = vpack.c.bf16 %v505_v11, %v503_v10  ;;  %v615_v53 = vld [vmem:[#allocation7 + $0x118] sm:$0xff]  ;;  %v617_v58 = vld [vmem:[#allocation7 + $0x128] sm:$0xff]  ;;  %v616_v61 = vld [vmem:[#allocation7 + $0x120] sm:$0xff] }
  0x7c   :  { %1308 = vmatpush3.bf16.msra.mxu1 %v1307_v15  ;;  %v504_v15 = vld [vmem:[#allocation7 + $0x90] sm:$0xff]  ;;  %v619_v59 = vld [vmem:[#allocation7 + $0x138] sm:$0xff]  ;;  %v620_v4 = vld [vmem:[#allocation7 + $0x140] sm:$0xff] }
  0x7d   :  { %1309 = vmatprep.subr.bf16.mxu1 %v1595_v51  ;;  %v1339_v18 = vpack.c.bf16 %v504_v15, %v502_v14  ;;  %v618_v62 = vld [vmem:[#allocation7 + $0x130] sm:$0xff]  ;;  %v623_v2 = vld [vmem:[#allocation7 + $0x158] sm:$0xff]  ;;  %v624_v10 = vld [vmem:[#allocation7 + $0x160] sm:$0xff] }
  0x7e   :  { %1284 = vmatpush3.bf16.msra.mxu0 %v1283_v20  ;;  %v506_v20 = vld [vmem:[#allocation7 + $0xa0] sm:$0xff]  ;;  %v622_v5 = vld [vmem:[#allocation7 + $0x150] sm:$0xff]  ;;  %v627_v8 = vld [vmem:[#allocation7 + $0x178] sm:$0xff] }
  0x7f   :  { %1286 = vmatprep.subr.bf16.mxu0 %v1285_v21  ;;  %v508_v21 = vld [vmem:[#allocation7 + $0xb0] sm:$0xff]  ;;  %v631_v14 = vld [vmem:[#allocation7 + $0x198] sm:$0xff]  ;;  %v628_v16 = vld [vmem:[#allocation7 + $0x180] sm:$0xff] }
  0x80   :  { %1311 = vmatpush3.bf16.msra.mxu1 %v1310_v24  ;;  %v1343_v22 = vpack.c.bf16 %v508_v21, %v506_v20  ;;  %v513_v24 = vld [vmem:[#allocation7 + $0xd8] sm:$0xff]  ;;  %v626_v11 = vld [vmem:[#allocation7 + $0x170] sm:$0xff] }
  0x81   :  { %1312 = vmatprep.subr.bf16.mxu1 %v1595_v51  ;;  %v1345_v25 = vpack.c.bf16 %v513_v24, %v511_v23  ;;  %v630_v17 = vld [vmem:[#allocation7 + $0x190] sm:$0xff]  ;;  %v635_v20 = vld [vmem:[#allocation7 + $0x1b8] sm:$0xff] }
  0x82   :  { %1288 = vmatpush3.bf16.msra.mxu0 %v1287_v29  ;;  %v515_v29 = vld [vmem:[#allocation7 + $0xe8] sm:$0xff]  ;;  %v634_v23 = vld [vmem:[#allocation7 + $0x1b0] sm:$0xff]  ;;  %v639_v26 = vld [vmem:[#allocation7 + $0x1d8] sm:$0xff] }
  0x83   :  { %1290 = vmatprep.subr.bf16.mxu0 %v1289_v30  ;;  %v517_v30 = vld [vmem:[#allocation7 + $0xf8] sm:$0xff] }
  0x84   :  { %1314 = vmatpush3.bf16.msra.mxu1 %v1313_v33  ;;  %v1349_v31 = vpack.c.bf16 %v517_v30, %v515_v29  ;;  %v516_v33 = vld [vmem:[#allocation7 + $0xf0] sm:$0xff] }
  0x85   :  { %1315 = vmatprep.subr.bf16.mxu1 %v1595_v51  ;;  %v1351_v34 = vpack.c.bf16 %v516_v33, %v514_v32  ;;  %v638_v29 = vld [vmem:[#allocation7 + $0x1d0] sm:$0xff]  ;;  %v643_v32 = vld [vmem:[#allocation7 + $0x1f8] sm:$0xff] }
  0x86   :  { %1292 = vmatpush3.bf16.msra.mxu0 %v1291_v38 }
  0x87   :  { %1294 = vmatprep.subr.bf16.mxu0 %v1293_v39 }
  0x88   :  { %1317 = vmatpush3.bf16.msra.mxu1 %v1316_v42 }
  0x89   :  { %1318 = vmatprep.subr.bf16.mxu1 %v1595_v51 }
  0x8a   :  { %1296 = vmatpush3.bf16.msra.mxu0 %v1295_v45 }
  0x8b   :  { %1322 = vmatprep.subr.bf16.mxu0 %v1321_v52  ;;  %v613_v52 = vld [vmem:[#allocation7 + $0x108] sm:$0xff] }
  0x8c   :  { %1320 = vmatpush3.bf16.msra.mxu1 %v1319_v46  ;;  %v1353_v54 = vpack.c.bf16 %v615_v53, %v613_v52 }
  0x8d   :  { %411 = vmatmul.mubr.f32.vlgmr.msra.gmra.mrb[2].mxu0 %v84_v47 }
  0x8e   :  { %594 = vmatprep.mubr.f32.mxu0 %v1597_v1  ;;  %1324 = vmatpush1.bf16.msra.mxu0 %v1323_v56  ;;  %v614_v56 = vld [vmem:[#allocation7 + $0x110] sm:$0xff] }
  0x8f   :  { %1164 = vmatmul.mubr.f32.vlgmr.msra.gmra.mrb[2].mxu1 %v86_v48  ;;  %1326 = vmatprep.subr.bf16.mxu0 %v1325_v60  ;;  %v1355_v57 = vpack.c.bf16 %v614_v56, %v612_v55  ;;  %v1357_v60 = vpack.c.bf16 %v619_v59, %v617_v58  ;;  %v740_v58 = vld [vmem:[#allocation7 + $0x208] sm:$0xff]  ;;  %v742_v59 = vld [vmem:[#allocation7 + $0x218] sm:$0xff] }
  0x90   :  { %721 = vmatprep.mubr.f32.mxu1 %v1597_v1  ;;  %1354 = vmatprep.subr.bf16.mxu1 %v1353_v54 }
  0x91   :  { %1356 = vmatpush1.bf16.msra.mxu1 %v1355_v57 }
  0x92   :  { %1328 = vmatpush1.bf16.msra.mxu0 %v1327_v63  ;;  %v1359_v63 = vpack.c.bf16 %v618_v62, %v616_v61  ;;  %1358 = vmatprep.subr.bf16.mxu1 %v1357_v60  ;;  %v1385_v60 = vpack.c.bf16 %v742_v59, %v740_v58  ;;  %v739_v61 = vld [vmem:[#allocation7 + $0x200] sm:$0xff]  ;;  %v741_v62 = vld [vmem:[#allocation7 + $0x210] sm:$0xff] }
  0x93   :  { %1330 = vmatprep.subr.bf16.mxu0 %v1329_v0  ;;  %v621_v0 = vld [vmem:[#allocation7 + $0x148] sm:$0xff] }
  0x94   :  { %v1361_v3 = vpack.c.bf16 %v623_v2, %v621_v0  ;;  %v744_v0 = vld [vmem:[#allocation7 + $0x228] sm:$0xff]  ;;  %v746_v2 = vld [vmem:[#allocation7 + $0x238] sm:$0xff] }
  0x95   :  { %1360 = vmatpush1.bf16.msra.mxu1 %v1359_v63  ;;  %v1387_v63 = vpack.c.bf16 %v741_v62, %v739_v61  ;;  %v865_v61 = vld [vmem:[#allocation8] sm:$0xff]  ;;  %v866_v62 = vld [vmem:[#allocation8 + $0x8] sm:$0xff] }
  0x96   :  { %1332 = vmatpush1.bf16.msra.mxu0 %v1331_v6  ;;  %v1363_v6 = vpack.c.bf16 %v622_v5, %v620_v4  ;;  %1362 = vmatprep.subr.bf16.mxu1 %v1361_v3  ;;  %v1389_v3 = vpack.c.bf16 %v746_v2, %v744_v0  ;;  %v743_v4 = vld [vmem:[#allocation7 + $0x220] sm:$0xff]  ;;  %v745_v5 = vld [vmem:[#allocation7 + $0x230] sm:$0xff]  ;;  %v868_v2 = vld [vmem:[#allocation8 + $0x18] sm:$0xff] }
  0x97   :  { %1334 = vmatprep.subr.bf16.mxu0 %v1333_v7  ;;  %v625_v7 = vld [vmem:[#allocation7 + $0x168] sm:$0xff]  ;;  %v867_v0 = vld [vmem:[#allocation8 + $0x10] sm:$0xff] }
  0x98   :  { %v1365_v9 = vpack.c.bf16 %v627_v8, %v625_v7  ;;  %v750_v7 = vld [vmem:[#allocation7 + $0x258] sm:$0xff] }
  0x99   :  { %1364 = vmatpush1.bf16.msra.mxu1 %v1363_v6  ;;  %v748_v6 = vld [vmem:[#allocation7 + $0x248] sm:$0xff] }
  0x9a   :  { %1336 = vmatpush1.bf16.msra.mxu0 %v1335_v12  ;;  %v1367_v12 = vpack.c.bf16 %v626_v11, %v624_v10  ;;  %1366 = vmatprep.subr.bf16.mxu1 %v1365_v9  ;;  %v1393_v8 = vpack.c.bf16 %v750_v7, %v748_v6  ;;  %v749_v9 = vld [vmem:[#allocation7 + $0x250] sm:$0xff]  ;;  %v752_v11 = vld [vmem:[#allocation7 + $0x268] sm:$0xff]  ;;  %v872_v6 = vld [vmem:[#allocation8 + $0x38] sm:$0xff] }
  0x9b   :  { %1338 = vmatprep.subr.bf16.mxu0 %v1337_v13  ;;  %v629_v13 = vld [vmem:[#allocation7 + $0x188] sm:$0xff] }
  0x9c   :  { %v1369_v15 = vpack.c.bf16 %v631_v14, %v629_v13  ;;  %v751_v14 = vld [vmem:[#allocation7 + $0x260] sm:$0xff] }
  0x9d   :  { %1368 = vmatpush1.bf16.msra.mxu1 %v1367_v12  ;;  %v754_v12 = vld [vmem:[#allocation7 + $0x278] sm:$0xff] }
  0x9e   :  { %1340 = vmatpush1.bf16.msra.mxu0 %v1339_v18  ;;  %v1371_v18 = vpack.c.bf16 %v630_v17, %v628_v16  ;;  %1370 = vmatprep.subr.bf16.mxu1 %v1369_v15  ;;  %v1397_v13 = vpack.c.bf16 %v754_v12, %v752_v11  ;;  %v753_v15 = vld [vmem:[#allocation7 + $0x270] sm:$0xff]  ;;  %v756_v17 = vld [vmem:[#allocation7 + $0x288] sm:$0xff]  ;;  %v876_v11 = vld [vmem:[#allocation8 + $0x58] sm:$0xff] }
  0x9f   :  { %1342 = vmatprep.subr.bf16.mxu0 %v1341_v19  ;;  %v633_v19 = vld [vmem:[#allocation7 + $0x1a8] sm:$0xff]  ;;  %v1399_v16 = vpack.c.bf16 %v753_v15, %v751_v14 }
  0xa0   :  { %v1373_v21 = vpack.c.bf16 %v635_v20, %v633_v19  ;;  %v755_v20 = vld [vmem:[#allocation7 + $0x280] sm:$0xff]  ;;  %v878_v14 = vld [vmem:[#allocation8 + $0x68] sm:$0xff] }
  0xa1   :  { %1372 = vmatpush1.bf16.msra.mxu1 %v1371_v18  ;;  %v758_v18 = vld [vmem:[#allocation7 + $0x298] sm:$0xff] }
  0xa2   :  { %1344 = vmatpush1.bf16.msra.mxu0 %v1343_v22  ;;  %v632_v22 = vld [vmem:[#allocation7 + $0x1a0] sm:$0xff]  ;;  %1374 = vmatprep.subr.bf16.mxu1 %v1373_v21  ;;  %v1401_v19 = vpack.c.bf16 %v758_v18, %v756_v17  ;;  %v757_v21 = vld [vmem:[#allocation7 + $0x290] sm:$0xff]  ;;  %v880_v17 = vld [vmem:[#allocation8 + $0x78] sm:$0xff] }
  0xa3   :  { %1346 = vmatprep.subr.bf16.mxu0 %v1345_v25  ;;  %v1375_v24 = vpack.c.bf16 %v634_v23, %v632_v22  ;;  %v637_v25 = vld [vmem:[#allocation7 + $0x1c8] sm:$0xff]  ;;  %v1403_v22 = vpack.c.bf16 %v757_v21, %v755_v20 }
  0xa4   :  { %v1377_v27 = vpack.c.bf16 %v639_v26, %v637_v25  ;;  %v760_v23 = vld [vmem:[#allocation7 + $0x2a8] sm:$0xff]  ;;  %v759_v26 = vld [vmem:[#allocation7 + $0x2a0] sm:$0xff] }
  0xa5   :  { %1376 = vmatpush1.bf16.msra.mxu1 %v1375_v24  ;;  %v762_v24 = vld [vmem:[#allocation7 + $0x2b8] sm:$0xff] }
  0xa6   :  { %1348 = vmatpush1.bf16.msra.mxu0 %v1347_v28  ;;  %v636_v28 = vld [vmem:[#allocation7 + $0x1c0] sm:$0xff]  ;;  %1378 = vmatprep.subr.bf16.mxu1 %v1377_v27  ;;  %v1405_v25 = vpack.c.bf16 %v762_v24, %v760_v23  ;;  %v761_v27 = vld [vmem:[#allocation7 + $0x2b0] sm:$0xff] }
  0xa7   :  { %1350 = vmatprep.subr.bf16.mxu0 %v1349_v31  ;;  %v1379_v30 = vpack.c.bf16 %v638_v29, %v636_v28  ;;  %v641_v31 = vld [vmem:[#allocation7 + $0x1e8] sm:$0xff]  ;;  %v1407_v28 = vpack.c.bf16 %v761_v27, %v759_v26 }
  0xa8   :  { %v1381_v33 = vpack.c.bf16 %v643_v32, %v641_v31  ;;  %v764_v29 = vld [vmem:[#allocation7 + $0x2c8] sm:$0xff]  ;;  %v763_v32 = vld [vmem:[#allocation7 + $0x2c0] sm:$0xff] }
  0xa9   :  { %1380 = vmatpush1.bf16.msra.mxu1 %v1379_v30  ;;  %v766_v30 = vld [vmem:[#allocation7 + $0x2d8] sm:$0xff] }
  0xaa   :  { %1352 = vmatpush1.bf16.msra.mxu0 %v1351_v34  ;;  %v640_v34 = vld [vmem:[#allocation7 + $0x1e0] sm:$0xff]  ;;  %1382 = vmatprep.subr.bf16.mxu1 %v1381_v33  ;;  %v1409_v31 = vpack.c.bf16 %v766_v30, %v764_v29  ;;  %v765_v33 = vld [vmem:[#allocation7 + $0x2d0] sm:$0xff] }
  0xab   :  { %1386 = vmatprep.subr.bf16.mxu0 %v1385_v60 }
 0x140   :  { %v1024_v35 = vpop.f32.mrb[0].mxu0 }
 0x141   :  { %v1025_v37 = vpop.f32.mrb[1].mxu0 }
 0x142   :  { %v1059_v38 = vpop.f32.mrb[0].mxu1  ;;  %v1026_v39 = vadd.f32 %v1025_v37, %v1024_v35  ;;  %v642_v35 = vld [vmem:[#allocation7 + $0x1f0] sm:$0xff]  ;;  %v520_v37 = vlaneseq }
 0x143   :  { %v1060_v40 = vpop.f32.mrb[1].mxu1 }
 0x144   :  { %v1061_v41 = vadd.f32 %v1060_v40, %v1059_v38  ;;  %v273_v42 = vadd.f32 %v1026_v39, %v985_v36  ;;  %v1383_v36 = vpack.c.bf16 %v642_v35, %v640_v34  ;;  %v521_v38 = vshrl.u32 %v520_v37, 7  ;;  %v518_v40 = vld [vmem:[%s1767_s4] sm:$0x3] }
 0x145   :  { %v1411_v34 = vpack.c.bf16 %v765_v33, %v763_v32  ;;  %v768_v35 = vld [vmem:[#allocation7 + $0x2e8] sm:$0xff] }
 0x146   :  { %v343_v43 = vadd.f32 %v1061_v41, %v273_v42  ;;  %1384 = vmatpush1.bf16.msra.mxu1 %v1383_v36  ;;  %v1713_v39 = vsub.s32 0, %v521_v38  ;;  %v770_v36 = vld [vmem:[#allocation7 + $0x2f8] sm:$0xff] }
 0x147   :  { %1417 = vmatprep.subr.bf16.mxu1 %v1595_v51  ;;  %v1413_v37 = vpack.c.bf16 %v770_v36, %v768_v35 }
 0x148   :  { %v523_v41 = vrot.slane %v518_v40, %v1713_v39 }
 0x160   :  { %v1094_v44 = vpop.f32.mrb[2].mxu0 }
 0x161   :  { %v1095_v45 = vpop.f32.mrb[3].mxu0 }
 0x162   :  { %v482_v46 = vpop.f32.mrb[2].mxu1  ;;  %v1096_v47 = vadd.f32 %v1095_v45, %v1094_v44 }
 0x163   :  { %v1165_v48 = vpop.f32.mrb[3].mxu1 }
 0x164   :  { %v413_v49 = vadd.f32 %v1096_v47, %v343_v43 }
 0x166   :  { %v1708_v50 = vadd.f32 %v482_v46, %v413_v49  ;;  %v1719_v46 = vsub.s32 1, %v521_v38  ;;  %v767_v38 = vld [vmem:[#allocation7 + $0x2e0] sm:$0xff] }
 0x168   :  { %595 = vmatmul.mubr.f32.vlgmr.msra.gmra.mrb[4].mxu0 %v1708_v50  ;;  %v527_v48 = vrot.slane %v518_v40, %v1719_v46  ;;  %v769_v40 = vld [vmem:[#allocation7 + $0x2f0] sm:$0xff] }
 0x169   :  { %848 = vmatprep.mubr.f32.mxu0 %v1597_v1  ;;  %1388 = vmatpush1.bf16.msra.mxu0 %v1387_v63  ;;  %v1418_v63 = vpack.c.bf16 %v866_v62, %v865_v61 }
 0x16a   :  { %1390 = vmatprep.subr.bf16.mxu0 %v1389_v3  ;;  %v1421_v3 = vpack.c.bf16 %v868_v2, %v867_v0 }
 0x23b   :  { %v596_v42 = vpop.f32.mrb[4].mxu0 }
 0x23c   :  { %v597_v43 = vadd.f32 %v596_v42, %v523_v41  ;;  %v598_v44 = vpop.f32.mrb[5].mxu0  ;;  %v1415_v41 = vpack.c.bf16 %v769_v40, %v767_v38  ;;  %v987_v42 = vld [vmem:[%s1767_s4 + $0x2] sm:$0x3] }
 0x23d   :  { %v599_v52 = vadd.f32 %v598_v44, %v527_v48 }
 0x23e   :  { %v986_v45 = vmul.f32 -1.442695, %v597_v43  ;;  %v650_v43 = vrot.slane %v987_v42, %v1713_v39 }
 0x23f   :  { %v607_v53 = vmax.f32 %v599_v52, 0.0  ;;  %v654_v52 = vrot.slane %v987_v42, %v1719_v46 }
 0x240   :  { %1453 = vpow2.f32 %v986_v45 }
 0x241   :  { %v608_v54 = vsub.f32 %v607_v53, %v1708_v50 }
 0x24a   :  { %v1454_v47 = vpop.eup %1453 }
 0x24b   :  { %v604_v49 = vadd.f32 1.0, %v1454_v47 }
 0x24d   :  { %1455 = vrcp.f32 %v604_v49 }
 0x257   :  { %v1456_v55 = vpop.eup %1455 }
 0x258   :  { %v609_v56 = vmul.f32 %v1456_v55, %v608_v54 }
 0x25a   :  { %v1724_v57 = vadd.f32 %v609_v56, %v1708_v50  ;;  %v1391_v50 = vpack.c.bf16 %v745_v5, %v743_v4  ;;  %v869_v4 = vld [vmem:[#allocation8 + $0x20] sm:$0xff]  ;;  %v870_v5 = vld [vmem:[#allocation8 + $0x28] sm:$0xff] }
 0x25c   :  { %722 = vmatmul.mubr.f32.vlgmr.msra.gmra.mrb[4].mxu1 %v1724_v57  ;;  %1392 = vmatpush1.bf16.msra.mxu0 %v1391_v50  ;;  %v1424_v50 = vpack.c.bf16 %v870_v5, %v869_v4 }
 0x25d   :  { %1198 = vmatprep.mubr.msk.f32.mxu1 %vm1596_vm0, %v1597_v1  ;;  %v747_v1 = vld [vmem:[#allocation7 + $0x240] sm:$0xff]  ;;  %1394 = vmatprep.subr.bf16.mxu0 %v1393_v8 }
 0x25e   :  { %v1395_v10 = vpack.c.bf16 %v749_v9, %v747_v1  ;;  %1419 = vmatpush3.bf16.msra.mxu1 %v1418_v63  ;;  %v873_v8 = vld [vmem:[#allocation8 + $0x40] sm:$0xff]  ;;  %v874_v1 = vld [vmem:[#allocation8 + $0x48] sm:$0xff] }
 0x25f   :  { %1420 = vmatprep.subr.bf16.mxu1 %v1595_v51  ;;  %v1430_v9 = vpack.c.bf16 %v874_v1, %v873_v8 }
 0x260   :  { %1396 = vmatpush1.bf16.msra.mxu0 %v1395_v10  ;;  %v875_v10 = vld [vmem:[#allocation8 + $0x50] sm:$0xff] }
 0x261   :  { %1398 = vmatprep.subr.bf16.mxu0 %v1397_v13  ;;  %v1433_v12 = vpack.c.bf16 %v876_v11, %v875_v10  ;;  %v877_v13 = vld [vmem:[#allocation8 + $0x60] sm:$0xff] }
 0x262   :  { %1422 = vmatpush3.bf16.msra.mxu1 %v1421_v3  ;;  %v1436_v15 = vpack.c.bf16 %v878_v14, %v877_v13 }
 0x263   :  { %1423 = vmatprep.subr.bf16.mxu1 %v1595_v51 }
 0x264   :  { %1400 = vmatpush1.bf16.msra.mxu0 %v1399_v16  ;;  %v879_v16 = vld [vmem:[#allocation8 + $0x70] sm:$0xff] }
 0x265   :  { %1402 = vmatprep.subr.bf16.mxu0 %v1401_v19  ;;  %v1439_v18 = vpack.c.bf16 %v880_v17, %v879_v16  ;;  %v989_v19 = vld [vmem:[%s1767_s4 + $0x4] sm:$0x3] }
 0x266   :  { %1425 = vmatpush3.bf16.msra.mxu1 %v1424_v50  ;;  %v777_v20 = vrot.slane %v989_v19, %v1713_v39  ;;  %v781_v26 = vrot.slane %v989_v19, %v1719_v46  ;;  %v991_v39 = vld [vmem:[%s1769_s6] ss:$0 sm:$0xff] }
 0x267   :  { %1426 = vmatprep.subr.bf16.mxu1 %v1595_v51 }
 0x268   :  { %1404 = vmatpush1.bf16.msra.mxu0 %v1403_v22 }
 0x269   :  { %1406 = vmatprep.subr.bf16.mxu0 %v1405_v25 }
 0x26c   :  { %1408 = vmatpush1.bf16.msra.mxu0 %v1407_v28 }
 0x26d   :  { %1410 = vmatprep.subr.bf16.mxu0 %v1409_v31 }
 0x270   :  { %1412 = vmatpush1.bf16.msra.mxu0 %v1411_v34 }
 0x271   :  { %1414 = vmatprep.subr.bf16.mxu0 %v1413_v37 }
 0x274   :  { %1416 = vmatpush1.bf16.msra.mxu0 %v1415_v41 }
 0x32f   :  { %v723_v44 = vpop.f32.mrb[4].mxu1 }
 0x330   :  { %v724_v45 = vadd.f32 %v723_v44, %v650_v43  ;;  %v725_v47 = vpop.f32.mrb[5].mxu1 }
 0x331   :  { %v726_v54 = vadd.f32 %v725_v47, %v654_v52 }
 0x332   :  { %v988_v48 = vmul.f32 -1.442695, %v724_v45 }
 0x333   :  { %v734_v55 = vmax.f32 %v726_v54, 0.0 }
 0x334   :  { %1457 = vpow2.f32 %v988_v48 }
 0x335   :  { %v735_v56 = vsub.f32 %v734_v55, %v1724_v57 }
 0x33e   :  { %v1458_v49 = vpop.eup %1457 }
 0x33f   :  { %v731_v53 = vadd.f32 1.0, %v1458_v49 }
 0x341   :  { %1459 = vrcp.f32 %v731_v53 }
 0x34b   :  { %v1460_v58 = vpop.eup %1459 }
 0x34c   :  { %v736_v59 = vmul.f32 %v1460_v58, %v735_v56 }
 0x34e   :  { %v737_v60 = vadd.f32 %v736_v59, %v1724_v57  ;;  %v871_v57 = vld [vmem:[#allocation8 + $0x30] sm:$0xff] }
 0x34f   :  { %v1427_v7 = vpack.c.bf16 %v872_v6, %v871_v57 }
 0x350   :  { %849 = vmatmul.mubr.f32.vlgmr.msra.gmra.mrb[6].mxu0 %v737_v60 }
 0x351   :  { %1428 = vmatpush3.bf16.msra.mxu1 %v1427_v7 }
 0x352   :  { %1429 = vmatprep.subr.bf16.mxu1 %v1595_v51 }
 0x355   :  { %1431 = vmatpush3.bf16.msra.mxu1 %v1430_v9 }
 0x356   :  { %1432 = vmatprep.subr.bf16.mxu1 %v1595_v51 }
 0x359   :  { %1434 = vmatpush3.bf16.msra.mxu1 %v1433_v12 }
 0x35a   :  { %1435 = vmatprep.subr.bf16.mxu1 %v1595_v51 }
 0x35d   :  { %1437 = vmatpush3.bf16.msra.mxu1 %v1436_v15 }
 0x35e   :  { %1438 = vmatprep.subr.bf16.mxu1 %v1595_v51 }
 0x361   :  { %1440 = vmatpush3.bf16.msra.mxu1 %v1439_v18 }
 0x423   :  { %v850_v21 = vpop.f32.mrb[6].mxu0 }
 0x424   :  { %v851_v22 = vadd.f32 %v850_v21, %v777_v20  ;;  %v852_v23 = vpop.f32.mrb[7].mxu0 }
 0x425   :  { %v853_v51 = vadd.f32 %v852_v23, %v781_v26 }
 0x426   :  { %v990_v24 = vmul.f32 -1.442695, %v851_v22 }
 0x427   :  { %v861_v28 = vmax.f32 %v853_v51, 0.0 }
 0x428   :  { %1461 = vpow2.f32 %v990_v24 }
 0x429   :  { %v862_v29 = vsub.f32 %v861_v28, %v737_v60 }
 0x432   :  { %v1462_v25 = vpop.eup %1461 }
 0x433   :  { %v858_v27 = vadd.f32 1.0, %v1462_v25 }
 0x435   :  { %1463 = vrcp.f32 %v858_v27 }
 0x43f   :  { %v1464_v30 = vpop.eup %1463 }
 0x440   :  { %v863_v31 = vmul.f32 %v1464_v30, %v862_v29 }
 0x442   :  { %v864_v32 = vadd.f32 %v863_v31, %v737_v60 }
 0x444   :  { %1199 = vmatmul.mubr.f32.vlgmr.msra.gmra.mrb[6].mxu1 %v864_v32 }
 0x517   :  { %v954_v33 = vpop.f32.mrb[6].mxu1 }
 0x518   :  { %v955_v34 = vadd.f32 %v991_v39, %v954_v33  ;;  %v1200_v35 = vpop.f32.mrb[7].mxu1 }
 0x51a   :  { %958 = vmax.xlane.f32.xlu0 %v955_v34 }
 0x5a7   :  { %v959_v36 = vpop.xlane.xlu0 %958 }
 0x5a8   :  { %v960_v37 = vsub.f32 %v955_v34, %v959_v36 }
 0x5aa   :  { %v961_v46 = vmul.f32 1.442695, %v960_v37 }
 0x5ac   :  { %1465 = vpow2.f32 %v961_v46 }
 0x5b6   :  { %v1466_v38 = vpop.eup %1465 }
 0x5b7   :  { %963 = vadd.xlane.f32.xlu0 %v1466_v38 }
 0x644   :  { %v964_v40 = vpop.xlane.xlu0 %963 }
 0x645   :  { %1467 = vrcp.f32 %v964_v40 }
 0x64f   :  { %v1468_v41 = vpop.eup %1467 }
 0x650   :  { %v966_v42 = vmul.f32 %v1468_v41, %v1466_v38 }
 0x652   :  { %967 = vst [vmem:[#allocation10] sm:$0xff] %v966_v42 }
 0x653   :  { %1568 = shalt.err (!%p1565_p8)
}
 0x654   :  { %s1569_s15 = scalar_lea.hbm %s1770_s7, 128 }
 0x655   :  { %p1570_p9 = scmp.ne.s32.totalorder %s1770_s7, %s1569_s15  ;;  %p1573_p10 = scmp.lt.u32.totalorder %s1569_s15, %s1770_s7 }
 0x657   :  { %p1575_p11 = pnand %p1573_p10, %p1570_p9 }
 0x659   :  { %1578 = shalt.err (!%p1575_p11)
}
 0x65a   :  { %977 = dma.vmem_to_hbm [thread:$0]  %s975_s13, 128, %s1770_s7, [#allocation4]  }
 0x65b   :  { %1585 = dma.done.wait [#allocation4], 128  }
 0x65c   :  { %1586 = vsyncadd [#allocation4], 4294967168 }
 0x65d   :  { %981 = vsyncpa [#allocation3], 1 }
 0x65e   :  { %982 = vsyncpa [#allocation6], 1 }
 0x65f   :  { %983 = vsyncpa [#allocation9], 1 }
 0x660   :  { %984 = vsyncpa [#allocation4], 1 }

</bundles_post_ra>
